<compile_context>
chip_gen: v5e
topology: v5e:2x2
jax: 0.10.0
libtpu: 0.0.40
codegen_flags: <defaults>
</compile_context>

<pallas_src>
import functools

import jax
import jax.numpy as jnp
import numpy as np
from jax import lax
from jax.experimental import pallas as pl
from jax.experimental.pallas import tpu as pltpu


def _round_up(a, b):
    return ((a + b - 1) // b) * b


def _vmem_capacity_bytes():
    try:
        return int(pltpu.get_tpu_info().vmem_capacity_bytes)
    except Exception:
        return 128 << 20  # v5e/v6e default


def _default_num_partials():
    # 2 TensorCores per chip only on v7x; single TC on v5e/v6e.
    try:
        kind = jax.devices()[0].device_kind.lower()
    except Exception:
        return 1
    return 2 if "v7" in kind else 1


def _ldam_loss_kernel(x_ref, tgt_ref, m_ref, out_ref, acc_ref, *, s, n_valid):
    # x_ref:   (TN, C)  f32 logits tile (ragged rows masked below)
    # tgt_ref: (TN, 1)  i32 target class indices
    # m_ref:   (1, C)   f32 per-class margins
    # out_ref: (1, 8, 128) f32 per-group partial sum (all lanes same value)
    # acc_ref: (TN, 1)  f32 per-row loss accumulator (VMEM scratch)
    c = pl.program_id(0)          # partial-sum / core group (parallel)
    i = pl.program_id(1)          # batch tile within the group (arbitrary)
    nt = pl.num_programs(1)

    @pl.when(i == 0)
    def _():
        acc_ref[...] = jnp.zeros_like(acc_ref)

    x = x_ref[...]                # (TN, C)
    tgt = tgt_ref[...]            # (TN, 1) int32
    m = m_ref[...]                # (1, C)

    TN, C = x.shape
    col = lax.broadcasted_iota(jnp.int32, (TN, C), 1)
    onehot = col == tgt           # (TN, C) one-hot of target

    # Margin only on the target logit; identical to where(onehot, x - m, x)
    # but without the batch_m gather-reduction of the original formulation.
    z = s * (x - jnp.where(onehot, m, 0.0))           # scaled logits

    # log-softmax + NLL (cross_entropy, weight=None, reduction='mean')
    z_max = jnp.max(z, axis=1, keepdims=True)                         # (TN, 1)
    lse = z_max + jnp.log(jnp.sum(jnp.exp(z - z_max), axis=1, keepdims=True))
    z_tgt = jnp.sum(jnp.where(onehot, z, 0.0), axis=1, keepdims=True)
    per_sample = lse - z_tgt                                          # (TN, 1)

    # Mask rows that are ragged-tile padding or clamped duplicate blocks
    # (global row index >= n_valid).  NaN/garbage in masked rows stays
    # confined to its own row and is discarded by this select.
    base = (c * nt + i) * TN
    row = base + lax.broadcasted_iota(jnp.int32, (TN, 1), 0)
    per_sample = jnp.where(row < n_valid, per_sample, 0.0)

    acc_ref[...] += per_sample    # VPU add, no per-step XLU reduce

    @pl.when(i == nt - 1)
    def _():
        total = jnp.sum(acc_ref[...])
        out_ref[...] = jnp.broadcast_to(total, out_ref.shape)


def ldam_loss_pallas(x, target, m_list, *, s=30.0, num_partials=None):
    """x: [N, C] f32, target: [N] int, m_list: [C] f32 -> scalar f32 loss."""
    N, C = x.shape
    Cp_eff = _round_up(C, 128)      # lane-padded class width (VMEM footprint)

    if num_partials is None:
        num_partials = _default_num_partials()
    NC = max(1, int(num_partials))
    NC = min(NC, max(1, N // 8))    # never more groups than 8-row tiles of work

    # Per-generation VMEM budgeting: x-tile bytes per buffer (counted at the
    # lane-padded width, since that is what occupies VMEM), total footprint
    # ~6-7x the tile (double buffer + z/exp/onehot temporaries + scratch).
    vmem_cap = _vmem_capacity_bytes()                       # 128 MiB v5e/v6e, 64 MiB v7x
    tile_budget = max(2 << 20, min(6 << 20, vmem_cap // 20))
    vmem_limit = int(min(vmem_cap * 3 // 4, 96 << 20))      # 96 MiB v5e/v6e, 48 MiB v7x

    tn_budget = max(8, (tile_budget // (4 * Cp_eff)) // 8 * 8)
    rows_per_group = -(-N // NC)
    TN = max(8, min(tn_budget, _round_up(rows_per_group, 8)))
    nt = -(-rows_per_group // TN)                           # tiles per group
    num_x_blocks = -(-N // TN)                              # valid row-blocks of x
    max_blk = num_x_blocks - 1

    # Only tiny reshapes in the wrapper; x itself is consumed unpadded.
    t_in = target.reshape(N, 1).astype(jnp.int32)
    m_in = m_list.reshape(1, C).astype(jnp.float32)
    x_in = x.astype(jnp.float32)

    kernel = functools.partial(_ldam_loss_kernel, s=float(s), n_valid=N)

    cost = pl.CostEstimate(
        flops=8 * N * C,
        transcendentals=N * C + N,
        bytes_accessed=4 * (N * C + N + C) + NC * 8 * 128 * 4,
    )

    # Blocks beyond the last valid x block (possible when NC groups over-cover
    # N) are clamped to the last block; their rows are masked in-kernel.
    def row_block(c, i):
        return (jnp.minimum(c * nt + i, max_blk), 0)

    partials = pl.pallas_call(
        kernel,
        out_shape=jax.ShapeDtypeStruct((NC, 8, 128), jnp.float32),
        grid=(NC, nt),
        in_specs=[
            pl.BlockSpec((TN, C), row_block),
            pl.BlockSpec((TN, 1), row_block),
            pl.BlockSpec((1, C), lambda c, i: (0, 0)),
        ],
        out_specs=pl.BlockSpec((1, 8, 128), lambda c, i: (c, 0, 0)),
        scratch_shapes=[pltpu.VMEM((TN, 1), jnp.float32)],
        compiler_params=pltpu.CompilerParams(
            dimension_semantics=("parallel", "arbitrary"),
            vmem_limit_bytes=vmem_limit,
        ),
        cost_estimate=cost,
    )(x_in, t_in, m_in)

    return jnp.sum(partials[:, 0, 0]) / jnp.float32(N)


def _reference_ldam_loss(x, target, m_list, s=30.0):
    """Plain-JAX reference mirroring the PyTorch _LDAMLoss.forward."""
    N, C = x.shape
    onehot = jax.nn.one_hot(target, C, dtype=jnp.float32)
    batch_m = onehot @ m_list.reshape(C, 1)            # (N, 1)
    x_m = x - batch_m
    output = jnp.where(onehot > 0, x_m, x)
    z = s * output
    logp = jax.nn.log_softmax(z, axis=1)
    nll = -jnp.take_along_axis(logp, target.reshape(N, 1), axis=1)
    return jnp.mean(nll)


if __name__ == "__main__":
    # Deterministic "parameter" setup, exactly as in __init__ (max_m=0.5, s=30).
    max_m = 0.5
    s = 30.0
    cls_num_list = np.array([500, 120, 60, 30, 300, 80, 40, 20,
                             250, 150, 70, 35, 400, 90, 45, 25], dtype=np.float64)
    m_np = 1.0 / np.sqrt(np.sqrt(cls_num_list))
    m_np = m_np * (max_m / np.max(m_np))
    m_list = jnp.asarray(m_np, dtype=jnp.float32)      # (C,)

    N, C = 8, 16
    key = jax.random.PRNGKey(0)
    kx, kt = jax.random.split(key)
    x = jax.random.normal(kx, (N, C), dtype=jnp.float32)
    target = jax.random.randint(kt, (N,), 0, C, dtype=jnp.int32)

    loss = ldam_loss_pallas(x, target, m_list, s=s)
    loss = jax.block_until_ready(loss)
    ref = _reference_ldam_loss(x, target, m_list, s=s)
    assert jnp.isfinite(loss), "loss is not finite"
    assert jnp.allclose(loss, ref, rtol=1e-4, atol=1e-4), (loss, ref)

    # Extra check: batch size that does not divide evenly into tiles/groups,
    # exercising the ragged-last-tile row mask and mean-over-true-N path.
    N2 = 13
    k2x, k2t = jax.random.split(jax.random.PRNGKey(1))
    x2 = jax.random.normal(k2x, (N2, C), dtype=jnp.float32)
    t2 = jax.random.randint(k2t, (N2,), 0, C, dtype=jnp.int32)
    loss2 = jax.block_until_ready(ldam_loss_pallas(x2, t2, m_list, s=s))
    ref2 = _reference_ldam_loss(x2, t2, m_list, s=s)
    assert jnp.isfinite(loss2), "loss2 is not finite"
    assert jnp.allclose(loss2, ref2, rtol=1e-4, atol=1e-4), (loss2, ref2)

    print("KERNEL_OK")
</pallas_src>

<mosaic_0001>
module attributes {stable_mosaic.version = 11 : i64} {
  func.func @_ldam_loss_kernel(%arg0: i32, %arg1: i32, %arg2: memref<8x16xf32, #tpu.memory_space<vmem>>, %arg3: memref<8x1xi32, #tpu.memory_space<vmem>>, %arg4: memref<1x16xf32, #tpu.memory_space<vmem>>, %arg5: memref<1x8x128xf32, #tpu.memory_space<vmem>>, %arg6: memref<8x1xf32, #tpu.memory_space<vmem>>) attributes {dimension_semantics = [#tpu.dimension_semantics<parallel>, #tpu.dimension_semantics<arbitrary>], iteration_bounds = array<i64: 1, 1>, scalar_prefetch = 0 : i64, scratch_operands = 1 : i64, tpu.core_type = #tpu.core_type<tc>, window_params = [{transform_indices = @transform_0, window_bounds = array<i64: 8, 16>}, {transform_indices = @transform_1, window_bounds = array<i64: 8, 1>}, {pipeline_mode = #tpu.pipeline_mode<synchronous>, transform_indices = @transform_2, window_bounds = array<i64: 1, 16>}, {transform_indices = @transform_3, window_bounds = array<i64: 1, 8, 128>}]} {
    %c0_i32 = arith.constant 0 : i32
    %0 = arith.cmpi eq, %arg1, %c0_i32 : i32
    %1 = arith.extui %0 : i1 to i32
    %c0_i32_0 = arith.constant 0 : i32
    %2 = arith.cmpi ne, %1, %c0_i32_0 : i32
    scf.if %2 {
      %cst_19 = arith.constant 0.000000e+00 : f32
      %46 = vector.broadcast %cst_19 : f32 to vector<8x1xf32>
      %c0_20 = arith.constant 0 : index
      %c0_21 = arith.constant 0 : index
      %47 = vector.load %arg6[%c0_20, %c0_21] : memref<8x1xf32, #tpu.memory_space<vmem>>, vector<8x1xf32>
      tpu.vector_store %arg6[%c0_20, %c0_21], %46 {strides = array<i32>} : memref<8x1xf32, #tpu.memory_space<vmem>>, vector<8x1xf32>,
    } else {
    }
    %c0 = arith.constant 0 : index
    %c0_1 = arith.constant 0 : index
    %3 = vector.load %arg2[%c0, %c0_1] : memref<8x16xf32, #tpu.memory_space<vmem>>, vector<8x16xf32>
    %c0_2 = arith.constant 0 : index
    %c0_3 = arith.constant 0 : index
    %4 = vector.load %arg3[%c0_2, %c0_3] : memref<8x1xi32, #tpu.memory_space<vmem>>, vector<8x1xi32>
    %c0_4 = arith.constant 0 : index
    %c0_5 = arith.constant 0 : index
    %5 = vector.load %arg4[%c0_4, %c0_5] : memref<1x16xf32, #tpu.memory_space<vmem>>, vector<1x16xf32>
    %6 = tpu.iota {dimensions = array<i32: 1>} : vector<8x16xi32>
    %7 = vector.broadcast %4 : vector<8x1xi32> to vector<8x16xi32>
    %8 = arith.cmpi eq, %6, %7 : vector<8x16xi32>
    %cst = arith.constant 0.000000e+00 : f32
    %9 = vector.shape_cast %5 : vector<1x16xf32> to vector<1x16xf32>
    %10 = vector.broadcast %9 : vector<1x16xf32> to vector<8x16xf32>
    %11 = vector.broadcast %cst : f32 to vector<8x16xf32>
    %12 = arith.select %8, %10, %11 : vector<8x16xi1>, vector<8x16xf32>
    %13 = arith.subf %3, %12 : vector<8x16xf32>
    %cst_6 = arith.constant 3.000000e+01 : f32
    %14 = vector.broadcast %cst_6 : f32 to vector<8x16xf32>
    %15 = arith.mulf %14, %13 : vector<8x16xf32>
    %cst_7 = arith.constant dense<0xFF800000> : vector<8xf32>
    %16 = vector.multi_reduction <maximumf>, %15, %cst_7 [1] : vector<8x16xf32> to vector<8xf32>
    %17 = vector.shape_cast %16 : vector<8xf32> to vector<8x1xf32>
    %18 = vector.broadcast %17 : vector<8x1xf32> to vector<8x16xf32>
    %19 = arith.subf %15, %18 : vector<8x16xf32>
    %20 = math.exp %19 : vector<8x16xf32>
    %cst_8 = arith.constant dense<0.000000e+00> : vector<8xf32>
    %21 = vector.multi_reduction <add>, %20, %cst_8 [1] : vector<8x16xf32> to vector<8xf32>
    %22 = vector.shape_cast %21 : vector<8xf32> to vector<8x1xf32>
    %23 = math.log %22 : vector<8x1xf32>
    %24 = arith.addf %17, %23 : vector<8x1xf32>
    %cst_9 = arith.constant 0.000000e+00 : f32
    %25 = vector.broadcast %cst_9 : f32 to vector<8x16xf32>
    %26 = arith.select %8, %15, %25 : vector<8x16xi1>, vector<8x16xf32>
    %cst_10 = arith.constant dense<0.000000e+00> : vector<8xf32>
    %27 = vector.multi_reduction <add>, %26, %cst_10 [1] : vector<8x16xf32> to vector<8xf32>
    %28 = vector.shape_cast %27 : vector<8xf32> to vector<8x1xf32>
    %29 = arith.subf %24, %28 : vector<8x1xf32>
    %c1_i32 = arith.constant 1 : i32
    %30 = arith.muli %arg0, %c1_i32 : i32
    %31 = arith.addi %30, %arg1 : i32
    %c8_i32 = arith.constant 8 : i32
    %32 = arith.muli %31, %c8_i32 : i32
    %33 = tpu.iota {dimensions = array<i32: 0>} : vector<8x1xi32>
    %34 = vector.broadcast %32 : i32 to vector<8x1xi32>
    %35 = arith.addi %34, %33 : vector<8x1xi32>
    %c8_i32_11 = arith.constant 8 : i32
    %36 = vector.broadcast %c8_i32_11 : i32 to vector<8x1xi32>
    %37 = arith.cmpi slt, %35, %36 : vector<8x1xi32>
    %cst_12 = arith.constant 0.000000e+00 : f32
    %38 = vector.broadcast %cst_12 : f32 to vector<8x1xf32>
    %39 = arith.select %37, %29, %38 : vector<8x1xi1>, vector<8x1xf32>
    %c0_13 = arith.constant 0 : index
    %c0_14 = arith.constant 0 : index
    %40 = vector.load %arg6[%c0_13, %c0_14] : memref<8x1xf32, #tpu.memory_space<vmem>>, vector<8x1xf32>
    %41 = arith.addf %40, %39 : vector<8x1xf32>
    %c0_15 = arith.constant 0 : index
    %c0_16 = arith.constant 0 : index
    %42 = vector.load %arg6[%c0_15, %c0_16] : memref<8x1xf32, #tpu.memory_space<vmem>>, vector<8x1xf32>
    tpu.vector_store %arg6[%c0_15, %c0_16], %41 {strides = array<i32>} : memref<8x1xf32, #tpu.memory_space<vmem>>, vector<8x1xf32>,
    %c0_i32_17 = arith.constant 0 : i32
    %43 = arith.cmpi eq, %arg1, %c0_i32_17 : i32
    %44 = arith.extui %43 : i1 to i32
    %c0_i32_18 = arith.constant 0 : i32
    %45 = arith.cmpi ne, %44, %c0_i32_18 : i32
    scf.if %45 {
      %c0_19 = arith.constant 0 : index
      %c0_20 = arith.constant 0 : index
      %46 = vector.load %arg6[%c0_19, %c0_20] : memref<8x1xf32, #tpu.memory_space<vmem>>, vector<8x1xf32>
      %47 = vector.shape_cast %46 : vector<8x1xf32> to vector<1x8x1xf32>
      %cst_21 = arith.constant dense<0.000000e+00> : vector<1xf32>
      %48 = vector.multi_reduction <add>, %47, %cst_21 [1, 2] : vector<1x8x1xf32> to vector<1xf32>
      %49 = vector.shape_cast %48 : vector<1xf32> to vector<1x1x1xf32>
      %50 = vector.extract %49[0, 0, 0] : f32 from vector<1x1x1xf32>
      %51 = vector.broadcast %50 : f32 to vector<1x8x128xf32>
      %c0_22 = arith.constant 0 : index
      %c0_23 = arith.constant 0 : index
      %c0_24 = arith.constant 0 : index
      %52 = vector.load %arg5[%c0_22, %c0_23, %c0_24] : memref<1x8x128xf32, #tpu.memory_space<vmem>>, vector<1x8x128xf32>
      tpu.vector_store %arg5[%c0_22, %c0_23, %c0_24], %51 {strides = array<i32>} : memref<1x8x128xf32, #tpu.memory_space<vmem>>, vector<1x8x128xf32>,
    } else {
    }
    return
  }
  func.func @transform_0(%arg0: i32, %arg1: i32) -> (i32, i32) {
    %c1_i32 = arith.constant 1 : i32
    %0 = arith.muli %arg0, %c1_i32 : i32
    %1 = arith.addi %0, %arg1 : i32
    %c0_i32 = arith.constant 0 : i32
    %2 = arith.minsi %1, %c0_i32 : i32
    %c0_i32_0 = arith.constant 0 : i32
    %c0_i32_1 = arith.constant 0 : i32
    return %2, %c0_i32_0 : i32, i32
  }
  func.func @transform_1(%arg0: i32, %arg1: i32) -> (i32, i32) {
    %c1_i32 = arith.constant 1 : i32
    %0 = arith.muli %arg0, %c1_i32 : i32
    %1 = arith.addi %0, %arg1 : i32
    %c0_i32 = arith.constant 0 : i32
    %2 = arith.minsi %1, %c0_i32 : i32
    %c0_i32_0 = arith.constant 0 : i32
    %c0_i32_1 = arith.constant 0 : i32
    return %2, %c0_i32_0 : i32, i32
  }
  func.func @transform_2(%arg0: i32, %arg1: i32) -> (i32, i32) {
    %c0_i32 = arith.constant 0 : i32
    %c0_i32_0 = arith.constant 0 : i32
    %c0_i32_1 = arith.constant 0 : i32
    return %c0_i32, %c0_i32_0 : i32, i32
  }
  func.func @transform_3(%arg0: i32, %arg1: i32) -> (i32, i32, i32) {
    %c0_i32 = arith.constant 0 : i32
    %c0_i32_0 = arith.constant 0 : i32
    %c0_i32_1 = arith.constant 0 : i32
    return %arg0, %c0_i32, %c0_i32_0 : i32, i32, i32
  }
}

</mosaic_0001>

<bundles_post_ra>
// kernel: tpu_custom_call.1
= control target key start
LH: loop header
LB: loop body
LE: loop exit
PB: predicated region body
PF: predicated region fallthrough
CT: control target
= control target key end

     0   :  { %v201_v1 = vmov 0   ;;  %s236_s0 = inlined_call_operand.vmem [shape: f32[8,16], index: 0, kind: input, shape index: {}]   ;;  %s237_s1 = inlined_call_operand.vmem [shape: s32[8,1], index: 1, kind: input, shape index: {}]   ;;  %s238_s2 = inlined_call_operand.vmem [shape: f32[1,16], index: 2, kind: input, shape index: {}]   ;;  %s239_s3 = inlined_call_operand.hbm [shape: f32[1,8,128], index: 3, kind: output, shape index: {}]  }
   0x1   :  { %v76_v0 = vld [vmem:[%s237_s1] sm:$0xff]  ;;  %169 = vset.pattern.permute.xlu0 %v201_v1 }
   0x2   :  { %8 = vsyncpa [#allocation4], 0  ;;  %81 = vperm.xlu0 %169, %v76_v0   ;;  %v78_v2 = vlaneseq  ;;  %v170_v4 = vld [vmem:[%s238_s2] ss:$0 sm:$0xff]  ;;  %vm90_vm1 = vcmask 130048   ;;  %vm73_vm2 = vcmask 7168  }
   0x3   :  { %v75_v6 = vld [vmem:[%s236_s0] sm:$0xff]  ;;  %v202_v18 = vmov 0.0   ;;  %s203_s0 = smov [#allocation3]   ;;  %s143_s19 = sshll.u32 %s239_s3, 4  ;;  %s144_s19 = int_to_ptr.hbm [resolvable:$true] %s143_s19 }
   0x4   :  { %v79_v3 = vand.u32 127, %v78_v2  ;;  %74 = vst.msk [vmem:[#allocation2] sm:$0xff] %vm73_vm2, %v202_v18  ;;  %s141_s1 = sshll.u32 %s203_s0, 4  ;;  %s142_s1 = int_to_ptr.vmem [resolvable:$true] %s141_s1 }
   0xb   :  { %v116_v24 = vld [vmem:[#allocation2] sm:$0xff] }
  0x74   :  { %v82_v5 = vpop.permute.xlu0 %81 }
  0x75   :  { %vm83_vm0 = vcmp.eq.s32.totalorder %v79_v3, %v82_v5 }
  0x76   :  { %v87_v7 = vsel %vm83_vm0, %v170_v4, 0.0 }
  0x77   :  { %v88_v8 = vsub.f32 %v75_v6, %v87_v7 }
  0x79   :  { %v89_v9 = vmul.f32 30.0, %v88_v8 }
  0x7b   :  { %v91_v10 = vsel %vm90_vm1, %v89_v9, -inf  ;;  %v103_v16 = vsel %vm83_vm0, %v89_v9, 0.0 }
  0x7c   :  { %92 = vmax.xlane.f32.xlu0 %v91_v10  ;;  %v104_v17 = vsel %vm90_vm1, %v103_v16, 0.0 }
  0xef   :  { %v93_v11 = vpop.xlane.xlu0 %92 }
  0xf0   :  { %v94_v12 = vsub.f32 %v89_v9, %v93_v11 }
  0xf2   :  { %v95_v13 = vmul.f32 1.442695, %v94_v12 }
  0xf4   :  { %171 = vpow2.f32 %v95_v13 }
  0xfa   :  { %v172_v14 = vpop.eup %171 }
  0xfb   :  { %v97_v15 = vsel %vm90_vm1, %v172_v14, 0.0 }
  0xfc   :  { %98 = vadd.xlane.f32.xlu1 %v97_v15 }
 0x104   :  { %105 = vadd.xlane.f32.xlu1 %v104_v17 }
 0x16f   :  { %v99_v19 = vpop.xlane.xlu1 %98 }
 0x170   :  { %173 = vlog2.f32 %v99_v19 }
 0x176   :  { %v174_v20 = vpop.eup %173 }
 0x177   :  { %v101_v21 = vmul.f32 0.6931472, %v174_v20  ;;  %v106_v23 = vpop.xlane.xlu1 %105 }
 0x179   :  { %v102_v22 = vadd.f32 %v101_v21, %v93_v11 }
 0x17b   :  { %v107_v25 = vsub.f32 %v102_v22, %v106_v23 }
 0x17d   :  { %v117_v26 = vadd.f32 %v116_v24, %v107_v25 }
 0x17f   :  { %119 = vst.msk [vmem:[#allocation2] sm:$0xff] %vm73_vm2, %v117_v26 }
 0x186   :  { %v123_v27 = vld [vmem:[#allocation2] sm:$0xff] }
 0x187   :  { %v124_v28 = vsel %vm73_vm2, %v123_v27, 0.0 }
 0x188   :  { %125 = vadd.xlane.f32.xlu2 %v124_v28 }
 0x1fb   :  { %v126_v29 = vpop.xlane.xlu2 %125 }
 0x1fc   :  { %v127_v30 = vrot.slane %v126_v29, 4 }
 0x1fe   :  { %v128_v31 = vadd.f32 %v127_v30, %v126_v29 }
 0x200   :  { %v129_v32 = vrot.slane %v128_v31, 2 }
 0x202   :  { %v130_v33 = vadd.f32 %v129_v32, %v128_v31 }
 0x204   :  { %v131_v34 = vrot.slane %v130_v33, 1 }
 0x206   :  { %v132_v35 = vadd.f32 %v131_v34, %v130_v33 }
 0x208   :  { %164 = vpush %v132_v35 }
 0x239   :  { %s165_s20 = spop %164 }
 0x23a   :  { %v134_v36 = vstv %s165_s20 }
 0x23b   :  { %135 = vst [vmem:[#allocation3] sm:$0xff] %v134_v36 }
 0x23c   :  { %146 = dma.vmem_to_hbm [thread:$0]  %s142_s1, 128, %s144_s19, [#allocation4]  }
 0x23d   :  { %199 = dma.done.wait [#allocation4], 128  }
 0x23e   :  { %200 = vsyncadd [#allocation4], 4294967168 }
 0x23f   :  { %151 = vsyncpa [#allocation4], 1 }

</bundles_post_ra>
